<compile_context>
chip_gen: v7x
topology: tpu7x:2x2x1
jax: 0.10.0
libtpu: 0.0.40
codegen_flags: <defaults>
</compile_context>

<pallas_src>
import jax
import jax.numpy as jnp
from jax.experimental import pallas as pl
from jax.experimental.pallas import tpu as pltpu

N_FEATURES = 1
N_HIDDEN = 8
N_OUTPUTS = 6

LANE = 128
OUT_ROWS = 8                 # N_OUTPUTS padded up to a full 8-sublane tile
PARAM_COLS = 128             # lane-dense (8, 128) parameter slab

# Column layout of the packed (8, 128) parameter slab (everything else 0):
#   col 0        : w1[:, 0]   (8 values: one per hidden unit / sublane)
#   col 1        : b1         (8 values)
#   cols 2 .. 9  : w2         ([6, 8]: row i = output i, col 2+j = hidden j)
#   col 10       : b2         (6 values, rows 6..7 zero)
_W1_COL = 0
_B1_COL = 1
_W2_COL = 2
_B2_COL = _W2_COL + N_HIDDEN

MAX_TILE_LANES = 32 * 1024   # (8, 32768) f32 output block ~= 1 MiB; tiny vs VMEM


def mlp_kernel(p_ref, x_ref, o_ref):
    # p_ref: [8, 128] param slab   x_ref: [1, TB] batch-on-lanes   o_ref: [8, TB]
    x = x_ref[...]                                   # (1, TB)

    w1 = p_ref[:, _W1_COL:_W1_COL + 1]               # (8, 1)
    b1 = p_ref[:, _B1_COL:_B1_COL + 1]               # (8, 1)
    b2 = p_ref[:, _B2_COL:_B2_COL + 1]               # (8, 1), rows >= 6 are 0

    # Layer 1 (K=1 contraction == outer product): a single broadcast MAC on
    # the VPU filling a full (8, TB) tile -- all 8 sublanes x 128 lanes used.
    h = jnp.maximum(w1 * x + b1, 0.0)                # (8, TB)

    # Layer 2: unrolled 8-term broadcast MAC.  The (8, 1) weight column for
    # hidden unit j multiplies the broadcast hidden row h[j]; zero-padded
    # weight/bias rows keep output rows 6..7 exactly 0.
    acc = b2 + p_ref[:, _W2_COL:_W2_COL + 1] * h[0:1, :]
    for j in range(1, N_HIDDEN):
        col = _W2_COL + j
        acc = acc + p_ref[:, col:col + 1] * h[j:j + 1, :]

    o_ref[...] = acc.astype(o_ref.dtype)             # one dense (8, TB) store


def _cdiv(a, b):
    return (a + b - 1) // b


def _round_up(n, m):
    return _cdiv(n, m) * m


def pack_params(w1, b1, w2, b2):
    """Pack all layer parameters into one (8, 128) f32 slab.

    Call once per parameter update (NOT per forward) and pass the slab to
    `net_forward` so the hot path does a single tiny resident DMA.
    """
    p = jnp.zeros((N_HIDDEN, PARAM_COLS), jnp.float32)
    p = p.at[:, _W1_COL].set(w1.astype(jnp.float32).reshape(-1))      # (8,)
    p = p.at[:, _B1_COL].set(b1.astype(jnp.float32))                  # (8,)
    p = p.at[:N_OUTPUTS, _W2_COL:_W2_COL + N_HIDDEN].set(w2.astype(jnp.float32))
    p = p.at[:N_OUTPUTS, _B2_COL].set(b2.astype(jnp.float32))
    return p


def _choose_batch_tile(b):
    # Big tiles amortize per-grid-step overhead; keep >= 2 steps when the
    # batch is large enough to split so the "parallel" grid axis gives v7x's
    # second TensorCore work.  Tiles are lane-aligned (multiple of 128).
    n_steps = _cdiv(b, MAX_TILE_LANES)
    if n_steps == 1 and b > 2 * LANE:
        n_steps = 2
    return _round_up(_cdiv(b, n_steps), LANE)


def net_forward(x, params, *, interpret=False):
    """Forward pass of Net as a single Pallas kernel.

    Args:
      x:      [B, n_features=1] input.
      params: (8, 128) f32 slab from `pack_params(w1, b1, w2, b2)`.
    Returns:
      [B, n_outputs=6] float32.
    """
    B, nf = x.shape
    assert nf == N_FEATURES, "Net is fixed at n_features=1"

    tb = _choose_batch_tile(B)
    b_pad = _round_up(B, tb)

    # Batch-on-lanes: (B, 1) -> lane-dense (1, b_pad) row (one contiguous DMA).
    x_lanes = x.astype(jnp.float32).reshape(1, B)
    if b_pad != B:
        x_lanes = jnp.pad(x_lanes, ((0, 0), (0, b_pad - B)))

    out_padded = pl.pallas_call(
        mlp_kernel,
        out_shape=jax.ShapeDtypeStruct((OUT_ROWS, b_pad), jnp.float32),
        grid=(b_pad // tb,),
        in_specs=[
            pl.BlockSpec((N_HIDDEN, PARAM_COLS), lambda i: (0, 0)),  # resident slab
            pl.BlockSpec((1, tb), lambda i: (0, i)),                 # lane-dense x
        ],
        out_specs=pl.BlockSpec((OUT_ROWS, tb), lambda i: (0, i)),
        compiler_params=pltpu.CompilerParams(
            dimension_semantics=("parallel",)),
        interpret=interpret,
    )(params, x_lanes)

    # (8, b_pad) -> real (B, 6) result.
    return out_padded[:N_OUTPUTS, :B].T


def reference_forward(x, w1, b1, w2, b2):
    # Pure-JAX reference mirroring the PyTorch forward exactly.
    h = jnp.maximum(x @ w1.T + b1, 0.0)
    return h @ w2.T + b2


if __name__ == "__main__":
    key = jax.random.PRNGKey(0)
    k_x, k_w1, k_b1, k_w2, k_b2 = jax.random.split(key, 5)

    # weight.data.normal_(0, 1) in the module -> standard normal weights.
    w1 = jax.random.normal(k_w1, (N_HIDDEN, N_FEATURES), dtype=jnp.float32)
    w2 = jax.random.normal(k_w2, (N_OUTPUTS, N_HIDDEN), dtype=jnp.float32)
    # Deterministic bias init (PyTorch default is uniform(-1/sqrt(in), 1/sqrt(in))).
    b1 = jax.random.uniform(k_b1, (N_HIDDEN,), dtype=jnp.float32,
                            minval=-1.0, maxval=1.0)
    b2 = jax.random.uniform(k_b2, (N_OUTPUTS,), dtype=jnp.float32,
                            minval=-1.0 / jnp.sqrt(8.0), maxval=1.0 / jnp.sqrt(8.0))

    # Params packed once, outside the per-call hot path.
    params = pack_params(w1, b1, w2, b2)

    # Small batch (DQN action-selection style).
    B = 8
    x = jax.random.normal(k_x, (B, N_FEATURES), dtype=jnp.float32)
    out = net_forward(x, params)
    jax.block_until_ready(out)
    ref = reference_forward(x, w1, b1, w2, b2)
    assert out.shape == (B, N_OUTPUTS)
    assert jnp.allclose(out, ref, atol=1e-4, rtol=1e-5), "mismatch vs reference (B=8)"

    # Larger, non-aligned batch: exercises padding + the 2-step "parallel" grid.
    B2 = 300
    x2 = jax.random.normal(k_x, (B2, N_FEATURES), dtype=jnp.float32)
    out2 = net_forward(x2, params)
    jax.block_until_ready(out2)
    ref2 = reference_forward(x2, w1, b1, w2, b2)
    assert out2.shape == (B2, N_OUTPUTS)
    assert jnp.allclose(out2, ref2, atol=1e-4, rtol=1e-5), "mismatch vs reference (B=300)"

    print("KERNEL_OK")
</pallas_src>

<mosaic_0001>
module attributes {stable_mosaic.version = 11 : i64} {
  func.func @mlp_kernel(%arg0: i32, %arg1: memref<8x128xf32, #tpu.memory_space<vmem>>, %arg2: memref<1x128xf32, #tpu.memory_space<vmem>>, %arg3: memref<8x128xf32, #tpu.memory_space<vmem>>) attributes {dimension_semantics = [#tpu.dimension_semantics<parallel>], iteration_bounds = array<i64: 1>, scalar_prefetch = 0 : i64, scratch_operands = 0 : i64, tpu.core_type = #tpu.core_type<tc>, window_params = [{pipeline_mode = #tpu.pipeline_mode<synchronous>, transform_indices = @transform_0, window_bounds = array<i64: 8, 128>}, {transform_indices = @transform_1, window_bounds = array<i64: 1, 128>}, {transform_indices = @transform_2, window_bounds = array<i64: 8, 128>}]} {
    %c0 = arith.constant 0 : index
    %c0_0 = arith.constant 0 : index
    %0 = vector.load %arg2[%c0, %c0_0] : memref<1x128xf32, #tpu.memory_space<vmem>>, vector<1x128xf32>
    %c0_1 = arith.constant 0 : index
    %c0_2 = arith.constant 0 : index
    %1 = vector.load %arg1[%c0_1, %c0_2] : memref<8x128xf32, #tpu.memory_space<vmem>>, vector<8x1xf32>
    %c0_3 = arith.constant 0 : index
    %c1 = arith.constant 1 : index
    %2 = vector.load %arg1[%c0_3, %c1] : memref<8x128xf32, #tpu.memory_space<vmem>>, vector<8x1xf32>
    %c0_4 = arith.constant 0 : index
    %c10 = arith.constant 10 : index
    %3 = vector.load %arg1[%c0_4, %c10] : memref<8x128xf32, #tpu.memory_space<vmem>>, vector<8x1xf32>
    %4 = vector.broadcast %1 : vector<8x1xf32> to vector<8x128xf32>
    %5 = vector.broadcast %0 : vector<1x128xf32> to vector<8x128xf32>
    %6 = arith.mulf %4, %5 : vector<8x128xf32>
    %7 = vector.broadcast %2 : vector<8x1xf32> to vector<8x128xf32>
    %8 = arith.addf %6, %7 : vector<8x128xf32>
    %cst = arith.constant 0.000000e+00 : f32
    %9 = vector.broadcast %cst : f32 to vector<8x128xf32>
    %10 = arith.maximumf %8, %9 : vector<8x128xf32>
    %c0_5 = arith.constant 0 : index
    %c2 = arith.constant 2 : index
    %11 = vector.load %arg1[%c0_5, %c2] : memref<8x128xf32, #tpu.memory_space<vmem>>, vector<8x1xf32>
    %12 = vector.extract_strided_slice %10 {offsets = [0, 0], sizes = [1, 128], strides = [1, 1]} : vector<8x128xf32> to vector<1x128xf32>
    %13 = vector.broadcast %11 : vector<8x1xf32> to vector<8x128xf32>
    %14 = vector.broadcast %12 : vector<1x128xf32> to vector<8x128xf32>
    %15 = arith.mulf %13, %14 : vector<8x128xf32>
    %16 = vector.broadcast %3 : vector<8x1xf32> to vector<8x128xf32>
    %17 = arith.addf %16, %15 : vector<8x128xf32>
    %c0_6 = arith.constant 0 : index
    %c3 = arith.constant 3 : index
    %18 = vector.load %arg1[%c0_6, %c3] : memref<8x128xf32, #tpu.memory_space<vmem>>, vector<8x1xf32>
    %19 = vector.extract_strided_slice %10 {offsets = [1, 0], sizes = [1, 128], strides = [1, 1]} : vector<8x128xf32> to vector<1x128xf32>
    %20 = vector.broadcast %18 : vector<8x1xf32> to vector<8x128xf32>
    %21 = vector.broadcast %19 : vector<1x128xf32> to vector<8x128xf32>
    %22 = arith.mulf %20, %21 : vector<8x128xf32>
    %23 = arith.addf %17, %22 : vector<8x128xf32>
    %c0_7 = arith.constant 0 : index
    %c4 = arith.constant 4 : index
    %24 = vector.load %arg1[%c0_7, %c4] : memref<8x128xf32, #tpu.memory_space<vmem>>, vector<8x1xf32>
    %25 = vector.extract_strided_slice %10 {offsets = [2, 0], sizes = [1, 128], strides = [1, 1]} : vector<8x128xf32> to vector<1x128xf32>
    %26 = vector.broadcast %24 : vector<8x1xf32> to vector<8x128xf32>
    %27 = vector.broadcast %25 : vector<1x128xf32> to vector<8x128xf32>
    %28 = arith.mulf %26, %27 : vector<8x128xf32>
    %29 = arith.addf %23, %28 : vector<8x128xf32>
    %c0_8 = arith.constant 0 : index
    %c5 = arith.constant 5 : index
    %30 = vector.load %arg1[%c0_8, %c5] : memref<8x128xf32, #tpu.memory_space<vmem>>, vector<8x1xf32>
    %31 = vector.extract_strided_slice %10 {offsets = [3, 0], sizes = [1, 128], strides = [1, 1]} : vector<8x128xf32> to vector<1x128xf32>
    %32 = vector.broadcast %30 : vector<8x1xf32> to vector<8x128xf32>
    %33 = vector.broadcast %31 : vector<1x128xf32> to vector<8x128xf32>
    %34 = arith.mulf %32, %33 : vector<8x128xf32>
    %35 = arith.addf %29, %34 : vector<8x128xf32>
    %c0_9 = arith.constant 0 : index
    %c6 = arith.constant 6 : index
    %36 = vector.load %arg1[%c0_9, %c6] : memref<8x128xf32, #tpu.memory_space<vmem>>, vector<8x1xf32>
    %37 = vector.extract_strided_slice %10 {offsets = [4, 0], sizes = [1, 128], strides = [1, 1]} : vector<8x128xf32> to vector<1x128xf32>
    %38 = vector.broadcast %36 : vector<8x1xf32> to vector<8x128xf32>
    %39 = vector.broadcast %37 : vector<1x128xf32> to vector<8x128xf32>
    %40 = arith.mulf %38, %39 : vector<8x128xf32>
    %41 = arith.addf %35, %40 : vector<8x128xf32>
    %c0_10 = arith.constant 0 : index
    %c7 = arith.constant 7 : index
    %42 = vector.load %arg1[%c0_10, %c7] : memref<8x128xf32, #tpu.memory_space<vmem>>, vector<8x1xf32>
    %43 = vector.extract_strided_slice %10 {offsets = [5, 0], sizes = [1, 128], strides = [1, 1]} : vector<8x128xf32> to vector<1x128xf32>
    %44 = vector.broadcast %42 : vector<8x1xf32> to vector<8x128xf32>
    %45 = vector.broadcast %43 : vector<1x128xf32> to vector<8x128xf32>
    %46 = arith.mulf %44, %45 : vector<8x128xf32>
    %47 = arith.addf %41, %46 : vector<8x128xf32>
    %c0_11 = arith.constant 0 : index
    %c8 = arith.constant 8 : index
    %48 = vector.load %arg1[%c0_11, %c8] : memref<8x128xf32, #tpu.memory_space<vmem>>, vector<8x1xf32>
    %49 = vector.extract_strided_slice %10 {offsets = [6, 0], sizes = [1, 128], strides = [1, 1]} : vector<8x128xf32> to vector<1x128xf32>
    %50 = vector.broadcast %48 : vector<8x1xf32> to vector<8x128xf32>
    %51 = vector.broadcast %49 : vector<1x128xf32> to vector<8x128xf32>
    %52 = arith.mulf %50, %51 : vector<8x128xf32>
    %53 = arith.addf %47, %52 : vector<8x128xf32>
    %c0_12 = arith.constant 0 : index
    %c9 = arith.constant 9 : index
    %54 = vector.load %arg1[%c0_12, %c9] : memref<8x128xf32, #tpu.memory_space<vmem>>, vector<8x1xf32>
    %55 = vector.extract_strided_slice %10 {offsets = [7, 0], sizes = [1, 128], strides = [1, 1]} : vector<8x128xf32> to vector<1x128xf32>
    %56 = vector.broadcast %54 : vector<8x1xf32> to vector<8x128xf32>
    %57 = vector.broadcast %55 : vector<1x128xf32> to vector<8x128xf32>
    %58 = arith.mulf %56, %57 : vector<8x128xf32>
    %59 = arith.addf %53, %58 : vector<8x128xf32>
    %c0_13 = arith.constant 0 : index
    %c0_14 = arith.constant 0 : index
    %60 = vector.load %arg3[%c0_13, %c0_14] : memref<8x128xf32, #tpu.memory_space<vmem>>, vector<8x128xf32>
    tpu.vector_store %arg3[%c0_13, %c0_14], %59 {strides = array<i32>} : memref<8x128xf32, #tpu.memory_space<vmem>>, vector<8x128xf32>,
    return
  }
  func.func @transform_0(%arg0: i32) -> (i32, i32) {
    %c0_i32 = arith.constant 0 : i32
    %c0_i32_0 = arith.constant 0 : i32
    %c0_i32_1 = arith.constant 0 : i32
    return %c0_i32, %c0_i32_0 : i32, i32
  }
  func.func @transform_1(%arg0: i32) -> (i32, i32) {
    %c0_i32 = arith.constant 0 : i32
    %c0_i32_0 = arith.constant 0 : i32
    return %c0_i32, %arg0 : i32, i32
  }
  func.func @transform_2(%arg0: i32) -> (i32, i32) {
    %c0_i32 = arith.constant 0 : i32
    %c0_i32_0 = arith.constant 0 : i32
    return %c0_i32, %arg0 : i32, i32
  }
}

</mosaic_0001>

<bundles_post_ra>
// kernel: tpu_custom_call.1
= control target key start
LH: loop header
LB: loop body
LE: loop exit
PB: predicated region body
PF: predicated region fallthrough
CT: control target
= control target key end

     0   :  { %7 = vsyncpa [#allocation3], 0  ;;  %s273_s0 = inlined_call_operand.hbm [shape: f32[8,128], index: 0, kind: input, shape index: {}]   ;;  %s274_s1 = inlined_call_operand.vmem [shape: f32[1,128], index: 1, kind: input, shape index: {}]   ;;  %s275_s2 = inlined_call_operand.hbm [shape: f32[8,128], index: 2, kind: output, shape index: {}]  }
   0x1   :  { %8 = vsyncpa [#allocation4], 0  ;;  %s218_s9 = smov [#allocation2]   ;;  %s170_s13 = scalar_lea.hbm %s273_s0, 128 }
   0x2   :  { %s15_s10 = sshll.u32 %s218_s9, 4  ;;  %p171_p0 = scmp.ne.s32.totalorder %s273_s0, %s170_s13  ;;  %s16_s10 = int_to_ptr.vmem [resolvable:$true] %s15_s10 }
   0x3   :  { %p174_p1 = scmp.lt.u32.totalorder %s170_s13, %s273_s0 }
   0x5   :  { %p176_p2 = pnand %p174_p1, %p171_p0 }
   0x7   :  { %179 = shalt.err (!%p176_p2)
}
   0x8   :  { %s180_s18 = scalar_lea.vmem %s16_s10, 128  ;;  %p185_p4 = scmp.lt.s32.totalorder %s16_s10, %s16_s10 }
   0x9   :  { %p181_p3 = scmp.ne.s32.totalorder %s16_s10, %s180_s18  ;;  %p186_p5 = scmp.lt.s32.totalorder %s180_s18, %s180_s18 }
   0xb   :  { %p187_p6 = por %p186_p5, %p185_p4 }
   0xd   :  { %p188_p7 = pnand %p187_p6, %p181_p3 }
   0xf   :  { %191 = shalt.err (!%p188_p7)
}
  0x10   :  { %18 = dma.hbm_to_vmem [thread:$0]  %s273_s0, 128, %s16_s10, [#allocation3]  }
  0x11   :  { %214 = dma.done.wait [#allocation3], 128  }
  0x12   :  { %215 = vsyncadd [#allocation3], 4294967168  ;;  %v219_v0 = vmov 2   ;;  %v220_v1 = vmov 0   ;;  %v25_v2 = vld [vmem:[#allocation2] sm:$0xff]  ;;  %v221_v3 = vmov 10   ;;  %v48_v12 = vlaneseq }
  0x13   :  { %160 = vset.pattern.permute.xlu1 %v219_v0  ;;  %158 = vset.pattern.permute.xlu0 %v220_v1  ;;  %v222_v4 = vmov 1   ;;  %v223_v5 = vmov 3   ;;  %v224_v6 = vmov 4   ;;  %v225_v7 = vmov 5   ;;  %v144_v13 = vld [vmem:[%s274_s1] ss:$0 sm:$0xff] }
  0x14   :  { %45 = vperm.xlu1 %160, %v25_v2   ;;  %28 = vperm.xlu0 %158, %v25_v2   ;;  %v226_v8 = vmov 7   ;;  %v227_v9 = vmov 6   ;;  %v228_v10 = vmov 9   ;;  %v229_v11 = vmov 8   ;;  %s230_s1 = smov [#allocation5]  }
  0x15   :  { %v49_v17 = vshrl.u32 %v48_v12, 7  ;;  %s135_s22 = sshll.u32 %s230_s1, 4  ;;  %s136_s22 = int_to_ptr.vmem [resolvable:$true] %s135_s22 }
  0x16   :  { %s192_s23 = scalar_lea.vmem %s136_s22, 128  ;;  %p197_p9 = scmp.lt.s32.totalorder %s136_s22, %s136_s22 }
  0x17   :  { %v50_v21 = vsub.s32 0, %v49_v17  ;;  %v64_v22 = vsub.s32 1, %v49_v17  ;;  %v74_v24 = vsub.s32 2, %v49_v17  ;;  %v84_v30 = vsub.s32 3, %v49_v17  ;;  %p193_p8 = scmp.ne.s32.totalorder %s136_s22, %s192_s23  ;;  %p198_p10 = scmp.lt.s32.totalorder %s192_s23, %s192_s23 }
  0x18   :  { %161 = vset.pattern.permute.xlu1 %v221_v3  ;;  %159 = vset.pattern.permute.xlu0 %v222_v4  ;;  %v94_v35 = vsub.s32 4, %v49_v17  ;;  %v104_v41 = vsub.s32 5, %v49_v17  ;;  %v114_v46 = vsub.s32 6, %v49_v17  ;;  %v124_v53 = vsub.s32 7, %v49_v17 }
  0x19   :  { %54 = vperm.xlu1 %161, %v25_v2   ;;  %39 = vperm.xlu0 %159, %v25_v2   ;;  %p199_p11 = por %p198_p10, %p197_p9 }
  0x1b   :  { %p200_p12 = pnand %p199_p11, %p193_p8 }
  0x1d   :  { %162 = vset.pattern.permute.xlu1 %v223_v5  ;;  %163 = vset.pattern.permute.xlu0 %v224_v6 }
  0x1e   :  { %59 = vperm.xlu1 %162, %v25_v2   ;;  %69 = vperm.xlu0 %163, %v25_v2  }
  0x22   :  { %164 = vset.pattern.permute.xlu1 %v225_v7  ;;  %166 = vset.pattern.permute.xlu0 %v226_v8 }
  0x23   :  { %79 = vperm.xlu1 %164, %v25_v2   ;;  %99 = vperm.xlu0 %166, %v25_v2  }
  0x27   :  { %165 = vset.pattern.permute.xlu1 %v227_v9  ;;  %169 = vset.pattern.permute.xlu0 %v228_v10 }
  0x28   :  { %89 = vperm.xlu1 %165, %v25_v2  }
  0x2c   :  { %167 = vset.pattern.permute.xlu1 %v229_v11 }
  0x2d   :  { %109 = vperm.xlu1 %167, %v25_v2  }
  0x31   :  { %168 = vset.pattern.permute.xlu1 %v228_v10 }
  0x32   :  { %119 = vperm.xlu1 %168, %v25_v2  }
  0x93   :  { %v46_v14 = vpop.permute.xlu1 %45  ;;  %v29_v15 = vpop.permute.xlu0 %28 }
  0x94   :  { %v37_v16 = vmul.f32 %v144_v13, %v29_v15 }
  0x98   :  { %v55_v18 = vpop.permute.xlu1 %54  ;;  %v40_v19 = vpop.permute.xlu0 %39 }
  0x99   :  { %v42_v20 = vadd.f32 %v40_v19, %v37_v16 }
  0x9b   :  { %v43_v23 = vmax.f32 %v42_v20, 0.0 }
  0x9d   :  { %v60_v25 = vpop.permute.xlu1 %59  ;;  %v51_v26 = vrot.slane %v43_v23, %v50_v21  ;;  %v65_v27 = vrot.slane %v43_v23, %v64_v22  ;;  %v75_v29 = vrot.slane %v43_v23, %v74_v24  ;;  %v70_v33 = vpop.permute.xlu0 %69  ;;  %v85_v38 = vrot.slane %v43_v23, %v84_v30 }
  0x9e   :  { %v95_v42 = vrot.slane %v43_v23, %v94_v35  ;;  %v105_v48 = vrot.slane %v43_v23, %v104_v41  ;;  %v115_v52 = vrot.slane %v43_v23, %v114_v46  ;;  %v125_v56 = vrot.slane %v43_v23, %v124_v53 }
  0x9f   :  { %v52_v28 = vmul.f32 %v51_v26, %v46_v14  ;;  %v66_v32 = vmul.f32 %v65_v27, %v60_v25  ;;  %v76_v37 = vmul.f32 %v75_v29, %v70_v33 }
  0xa1   :  { %v57_v31 = vadd.f32 %v55_v18, %v52_v28 }
  0xa2   :  { %v80_v34 = vpop.permute.xlu1 %79  ;;  %v100_v47 = vpop.permute.xlu0 %99 }
  0xa3   :  { %v67_v36 = vadd.f32 %v66_v32, %v57_v31  ;;  %v86_v40 = vmul.f32 %v85_v38, %v80_v34  ;;  %v106_v50 = vmul.f32 %v105_v48, %v100_v47 }
  0xa5   :  { %v77_v39 = vadd.f32 %v76_v37, %v67_v36 }
  0xa7   :  { %v87_v43 = vadd.f32 %v86_v40, %v77_v39  ;;  %v90_v44 = vpop.permute.xlu1 %89 }
  0xa8   :  { %v96_v45 = vmul.f32 %v95_v42, %v90_v44 }
  0xaa   :  { %v97_v49 = vadd.f32 %v96_v45, %v87_v43 }
  0xac   :  { %v110_v51 = vpop.permute.xlu1 %109  ;;  %v107_v54 = vadd.f32 %v106_v50, %v97_v49 }
  0xad   :  { %v116_v55 = vmul.f32 %v115_v52, %v110_v51 }
  0xaf   :  { %v117_v58 = vadd.f32 %v116_v55, %v107_v54 }
  0xb1   :  { %v120_v57 = vpop.permute.xlu1 %119 }
  0xb2   :  { %v126_v59 = vmul.f32 %v125_v56, %v120_v57 }
  0xb4   :  { %v127_v60 = vadd.f32 %v126_v59, %v117_v58 }
  0xb6   :  { %128 = vst [vmem:[#allocation5] sm:$0xff] %v127_v60 }
  0xb7   :  { %203 = shalt.err (!%p200_p12)
}
  0xb8   :  { %s204_s26 = scalar_lea.hbm %s275_s2, 128 }
  0xb9   :  { %p205_p13 = scmp.ne.s32.totalorder %s275_s2, %s204_s26  ;;  %p208_p0 = scmp.lt.u32.totalorder %s204_s26, %s275_s2 }
  0xbb   :  { %p210_p1 = pnand %p208_p0, %p205_p13 }
  0xbd   :  { %213 = shalt.err (!%p210_p1)
}
  0xbe   :  { %138 = dma.vmem_to_hbm [thread:$0]  %s136_s22, 128, %s275_s2, [#allocation4]  }
  0xbf   :  { %216 = dma.done.wait [#allocation4], 128  }
  0xc0   :  { %217 = vsyncadd [#allocation4], 4294967168 }
  0xc1   :  { %142 = vsyncpa [#allocation3], 1 }
  0xc2   :  { %143 = vsyncpa [#allocation4], 1 }

</bundles_post_ra>
